<compile_context>
chip_gen: v5e
topology: v5e:2x2
jax: 0.10.0
libtpu: 0.0.40
codegen_flags: <defaults>
</compile_context>

<pallas_src>
import functools
import math

import jax
import jax.numpy as jnp
from jax.experimental import pallas as pl
from jax.experimental.pallas import tpu as pltpu


def _ghost_kernel(x_ref, w1_ref, b1_ref, taps_ref, mask_ref, b2_ref, out_ref,
                  *, width, n1, n2):
    # x_ref   : (Nb, Cin, H*W)   channel-planar input block (NCHW, HW fused)
    # w1_ref  : (Cin, n1, 1)     1x1 conv weight columns (BN scale folded)
    # b1_ref  : (n1, 1)          primary BN shift
    # taps_ref: (9, n2, 1)       3x3 depthwise weights (BN scale folded)
    # mask_ref: (9, 1, H*W)      per-tap boundary (zero-padding) lane masks
    # b2_ref  : (n2, 1)          cheap-op BN shift
    # out_ref : (Nb, Cout, H*W)  channel-planar output block
    nb, cin, hw = x_ref.shape

    w1 = w1_ref[...]
    b1 = b1_ref[...]
    taps = taps_ref[...]
    masks = mask_ref[...]
    b2 = b2_ref[...]

    # Hoist the per-tap (channel-scale x boundary-mask) planes out of the
    # per-image loop: (n2, 1) * (1, HW) -> (n2, HW), built once per grid step.
    wm = [taps[k] * masks[k] for k in range(9)]

    for b in range(nb):            # Python-unrolled; wrapper keeps nb <= 8
        xb = x_ref[b]              # (Cin, HW)

        # ---- primary_conv: 1x1 conv (+ folded BN) + ReLU -------------------
        # Contract over Cin only (exact conv FLOPs); Cin VPU FMAs with
        # sublane-broadcast input rows and lane-broadcast weight columns.
        acc1 = xb[0:1, :] * w1[0]                      # (1,HW)*(n1,1)->(n1,HW)
        for c in range(1, cin):
            acc1 = acc1 + xb[c:c + 1, :] * w1[c]
        y1 = jnp.maximum(acc1 + b1, 0.0)               # (n1, HW)
        out_ref[b, :n1, :] = y1.astype(out_ref.dtype)

        # ---- cheap_operation: depthwise 3x3 (stride 1, pad 1) + BN + ReLU --
        # Neighbour (h+dy, w+dx) of pixel l = h*W+w is one lane roll by
        # -(dy*W+dx); boundary zeros come from the mask folded into wm.
        z = y1[:n2, :]                                 # (n2, HW)
        acc2 = z * wm[4] + b2                          # centre tap, b2 folded
        for ky in range(3):
            dy = ky - 1
            for kx in range(3):
                dx = kx - 1
                if dy == 0 and dx == 0:
                    continue
                shift = (-(dy * width + dx)) % hw
                t = pltpu.roll(z, shift=shift, axis=1)
                acc2 = acc2 + t * wm[ky * 3 + kx]
        y2 = jnp.maximum(acc2, 0.0)                    # (n2, HW)
        out_ref[b, n1:, :] = y2.astype(out_ref.dtype)


def prepare_ghost_params(w1, g1, be1, m1, v1, wdw, g2, be2, m2, v2,
                         out_channels, height, width, eps=1e-5):
    """Fold eval-mode BN into the conv weights and build the small,
    channel-planar operands the kernel consumes (all O(params) or O(H*W),
    never O(params x spatial) or O(W^2))."""
    cin, cinit = w1.shape
    cnew = wdw.shape[2]
    cout = out_channels
    assert cnew == cinit, "kernel supports expansion_ratio == 2 only"
    assert cout >= 2, "need at least one primary and one ghost channel"
    n1 = min(cinit, cout)                 # surviving primary channels
    n2 = cout - n1                        # surviving ghost channels
    assert 1 <= n2 <= cnew

    s1 = g1 / jnp.sqrt(v1 + eps)
    b1 = be1 - m1 * s1
    s2 = g2 / jnp.sqrt(v2 + eps)
    b2 = be2 - m2 * s2

    w1_k = (w1 * s1[None, :])[:, :n1][:, :, None]          # (Cin, n1, 1)
    b1_k = b1[:n1][:, None]                                 # (n1, 1)
    taps_k = (wdw * s2[None, None, :])[:, :, :n2].reshape(9, n2)[:, :, None]
    b2_k = b2[:n2][:, None]                                 # (n2, 1)

    # Per-tap zero-padding masks over the fused H*W lane axis (dtype f32 so
    # they fold multiplicatively into the tap weights in-kernel).
    hh = jnp.arange(height)
    ww = jnp.arange(width)
    rows = []
    for ky in range(3):
        dy = ky - 1
        ok_h = ((hh + dy >= 0) & (hh + dy < height)).astype(jnp.float32)
        for kx in range(3):
            dx = kx - 1
            ok_w = ((ww + dx >= 0) & (ww + dx < width)).astype(jnp.float32)
            rows.append((ok_h[:, None] * ok_w[None, :]).reshape(-1))
    masks_k = jnp.stack(rows, axis=0)[:, None, :]            # (9, 1, H*W)

    return w1_k, b1_k, taps_k, masks_k, b2_k


def _pick_block_batch(n, bytes_per_image, target_bytes=2 << 20, max_images=8):
    """Images per grid step: big enough to amortize the ~0.35us/step overhead,
    small enough to stay far below v7x's 64 MiB VMEM, a divisor of N, and
    (when possible) leaving an even grid length for v7x's two TensorCores.
    max_images bounds the Python-unrolled per-image loop in the kernel."""
    best = 1
    for nb in range(1, min(n, max_images) + 1):
        if n % nb:
            continue
        if nb > 1 and nb * bytes_per_image > target_bytes:
            break
        best = nb
    if (n // best) % 2 == 1:
        for nb in range(best - 1, 0, -1):
            if n % nb == 0 and (n // nb) % 2 == 0:
                best = nb
                break
    return best


def ghost_module_pallas(x_nchw, kparams, out_channels):
    """x_nchw: (N, Cin, H, W) float32. Returns (N, out_channels, H, W)."""
    w1_k, b1_k, taps_k, masks_k, b2_k = kparams
    N, Cin, H, W = x_nchw.shape
    HW = H * W
    Cout = out_channels
    n1 = w1_k.shape[1]
    n2 = taps_k.shape[1]
    assert n1 + n2 == Cout

    # NCHW with (H, W) fused: a contiguous trailing-dim reshape only (no
    # transpose on either side of the pallas_call).
    # Note: for lane-dense (unmasked) stores prefer H*W % 128 == 0; other
    # sizes stay correct but store with lane masking.
    x3 = x_nchw.reshape(N, Cin, HW)

    nb = _pick_block_batch(N, bytes_per_image=(Cin + Cout) * HW * 4)
    grid = (N // nb,)

    block_bytes = nb * (Cin + Cout) * HW * 4
    param_bytes = sum(int(a.size) * 4 for a in (w1_k, b1_k, taps_k, masks_k, b2_k))
    # Double-buffered blocks + params + slack; nb sizing keeps this far under
    # v7x's 64 MiB physical VMEM.
    vmem_limit = int(max(16 << 20, 4 * block_bytes + 4 * param_bytes + (2 << 20)))

    kernel = functools.partial(_ghost_kernel, width=W, n1=n1, n2=n2)

    # The four parameter operands are grid-invariant and tiny (<100 KiB here);
    # at production sizes mark them pipeline_mode=pl.Buffered(1) to skip the
    # second pipeline buffer.
    out3 = pl.pallas_call(
        kernel,
        out_shape=jax.ShapeDtypeStruct((N, Cout, HW), jnp.float32),
        grid_spec=pltpu.PrefetchScalarGridSpec(
            num_scalar_prefetch=0,
            grid=grid,
            in_specs=[
                pl.BlockSpec((nb, Cin, HW), lambda i: (i, 0, 0)),
                pl.BlockSpec(w1_k.shape, lambda i: (0, 0, 0)),
                pl.BlockSpec(b1_k.shape, lambda i: (0, 0)),
                pl.BlockSpec(taps_k.shape, lambda i: (0, 0, 0)),
                pl.BlockSpec(masks_k.shape, lambda i: (0, 0, 0)),
                pl.BlockSpec(b2_k.shape, lambda i: (0, 0)),
            ],
            out_specs=pl.BlockSpec((nb, Cout, HW), lambda i: (i, 0, 0)),
        ),
        compiler_params=pltpu.CompilerParams(
            dimension_semantics=("parallel",),
            vmem_limit_bytes=vmem_limit),
    )(x3, w1_k, b1_k, taps_k, masks_k, b2_k)

    return out3.reshape(N, Cout, H, W)


def _reference(x_nchw, raw, out_channels, eps=1e-5):
    """Pure-JAX reference (NHWC math) for correctness check."""
    (w1, g1, be1, m1, v1, wdw, g2, be2, m2, v2) = raw
    x = jnp.transpose(x_nchw, (0, 2, 3, 1))
    N, H, W, Cin = x.shape
    y1 = jnp.einsum('nhwc,cd->nhwd', x, w1)
    y1 = (y1 - m1) / jnp.sqrt(v1 + eps) * g1 + be1
    y1 = jnp.maximum(y1, 0.0)
    xp = jnp.pad(y1, ((0, 0), (1, 1), (1, 1), (0, 0)))
    acc = jnp.zeros_like(y1)
    for dy in range(3):
        for dx in range(3):
            acc = acc + xp[:, dy:dy + H, dx:dx + W, :] * wdw[dy, dx, :]
    y2 = (acc - m2) / jnp.sqrt(v2 + eps) * g2 + be2
    y2 = jnp.maximum(y2, 0.0)
    out = jnp.concatenate([y1, y2], axis=-1)[:, :, :, :out_channels]
    return jnp.transpose(out, (0, 3, 1, 2))


if __name__ == "__main__":
    # Module config (PyTorch defaults): kernel_size=1, expansion_ratio=2,
    # dw_size=3, stride=1, relu=True.
    in_channels, out_channels = 4, 8
    expansion_ratio = 2
    init_channels = math.ceil(out_channels / expansion_ratio)      # 4
    new_channels = init_channels * (expansion_ratio - 1)           # 4
    N, H, W = 2, 16, 16
    eps = 1e-5

    key = jax.random.PRNGKey(0)
    ks = jax.random.split(key, 11)

    x = jax.random.normal(ks[0], (N, in_channels, H, W), jnp.float32)

    # deterministic synthetic parameters (not a checkpoint load)
    w1 = 0.1 * jax.random.normal(ks[1], (in_channels, init_channels), jnp.float32)
    g1 = 1.0 + 0.1 * jax.random.normal(ks[2], (init_channels,), jnp.float32)
    be1 = 0.1 * jax.random.normal(ks[3], (init_channels,), jnp.float32)
    m1 = 0.1 * jax.random.normal(ks[4], (init_channels,), jnp.float32)
    v1 = jax.random.uniform(ks[5], (init_channels,), jnp.float32, 0.5, 1.5)

    wdw = 0.1 * jax.random.normal(ks[6], (3, 3, init_channels), jnp.float32)
    g2 = 1.0 + 0.1 * jax.random.normal(ks[7], (new_channels,), jnp.float32)
    be2 = 0.1 * jax.random.normal(ks[8], (new_channels,), jnp.float32)
    m2 = 0.1 * jax.random.normal(ks[9], (new_channels,), jnp.float32)
    v2 = jax.random.uniform(ks[10], (new_channels,), jnp.float32, 0.5, 1.5)

    kparams = prepare_ghost_params(w1, g1, be1, m1, v1, wdw, g2, be2, m2, v2,
                                   out_channels, H, W, eps)

    out = ghost_module_pallas(x, kparams, out_channels)
    out = jax.block_until_ready(out)

    ref = _reference(x, (w1, g1, be1, m1, v1, wdw, g2, be2, m2, v2),
                     out_channels, eps)
    assert out.shape == (N, out_channels, H, W)
    assert jnp.allclose(out, ref, atol=1e-4, rtol=1e-4), "mismatch vs reference"

    print("KERNEL_OK")
</pallas_src>

<mosaic_0001>
module attributes {stable_mosaic.version = 11 : i64} {
  func.func @_ghost_kernel(%arg0: i32, %arg1: memref<1x4x256xf32, #tpu.memory_space<vmem>>, %arg2: memref<4x4x1xf32, #tpu.memory_space<vmem>>, %arg3: memref<4x1xf32, #tpu.memory_space<vmem>>, %arg4: memref<9x4x1xf32, #tpu.memory_space<vmem>>, %arg5: memref<9x1x256xf32, #tpu.memory_space<vmem>>, %arg6: memref<4x1xf32, #tpu.memory_space<vmem>>, %arg7: memref<1x8x256xf32, #tpu.memory_space<vmem>>) attributes {dimension_semantics = [#tpu.dimension_semantics<parallel>], iteration_bounds = array<i64: 2>, scalar_prefetch = 0 : i64, scratch_operands = 0 : i64, tpu.core_type = #tpu.core_type<tc>, window_params = [{transform_indices = @transform_0, window_bounds = array<i64: 1, 4, 256>}, {pipeline_mode = #tpu.pipeline_mode<synchronous>, transform_indices = @transform_1, window_bounds = array<i64: 4, 4, 1>}, {pipeline_mode = #tpu.pipeline_mode<synchronous>, transform_indices = @transform_2, window_bounds = array<i64: 4, 1>}, {pipeline_mode = #tpu.pipeline_mode<synchronous>, transform_indices = @transform_3, window_bounds = array<i64: 9, 4, 1>}, {pipeline_mode = #tpu.pipeline_mode<synchronous>, transform_indices = @transform_4, window_bounds = array<i64: 9, 1, 256>}, {pipeline_mode = #tpu.pipeline_mode<synchronous>, transform_indices = @transform_5, window_bounds = array<i64: 4, 1>}, {transform_indices = @transform_6, window_bounds = array<i64: 1, 8, 256>}]} {
    %c0 = arith.constant 0 : index
    %c0_0 = arith.constant 0 : index
    %c0_1 = arith.constant 0 : index
    %0 = vector.load %arg2[%c0, %c0_0, %c0_1] : memref<4x4x1xf32, #tpu.memory_space<vmem>>, vector<4x4x1xf32>
    %c0_2 = arith.constant 0 : index
    %c0_3 = arith.constant 0 : index
    %1 = vector.load %arg3[%c0_2, %c0_3] : memref<4x1xf32, #tpu.memory_space<vmem>>, vector<4x1xf32>
    %c0_4 = arith.constant 0 : index
    %c0_5 = arith.constant 0 : index
    %c0_6 = arith.constant 0 : index
    %2 = vector.load %arg4[%c0_4, %c0_5, %c0_6] : memref<9x4x1xf32, #tpu.memory_space<vmem>>, vector<9x4x1xf32>
    %c0_7 = arith.constant 0 : index
    %c0_8 = arith.constant 0 : index
    %c0_9 = arith.constant 0 : index
    %3 = vector.load %arg5[%c0_7, %c0_8, %c0_9] : memref<9x1x256xf32, #tpu.memory_space<vmem>>, vector<9x1x256xf32>
    %c0_10 = arith.constant 0 : index
    %c0_11 = arith.constant 0 : index
    %4 = vector.load %arg6[%c0_10, %c0_11] : memref<4x1xf32, #tpu.memory_space<vmem>>, vector<4x1xf32>
    %5 = vector.extract_strided_slice %2 {offsets = [0, 0, 0], sizes = [1, 4, 1], strides = [1, 1, 1]} : vector<9x4x1xf32> to vector<1x4x1xf32>
    %6 = vector.shape_cast %5 : vector<1x4x1xf32> to vector<4x1xf32>
    %7 = vector.extract_strided_slice %3 {offsets = [0, 0, 0], sizes = [1, 1, 256], strides = [1, 1, 1]} : vector<9x1x256xf32> to vector<1x1x256xf32>
    %8 = vector.shape_cast %7 : vector<1x1x256xf32> to vector<1x256xf32>
    %9 = vector.broadcast %6 : vector<4x1xf32> to vector<4x256xf32>
    %10 = vector.broadcast %8 : vector<1x256xf32> to vector<4x256xf32>
    %11 = arith.mulf %9, %10 : vector<4x256xf32>
    %12 = vector.extract_strided_slice %2 {offsets = [1, 0, 0], sizes = [1, 4, 1], strides = [1, 1, 1]} : vector<9x4x1xf32> to vector<1x4x1xf32>
    %13 = vector.shape_cast %12 : vector<1x4x1xf32> to vector<4x1xf32>
    %14 = vector.extract_strided_slice %3 {offsets = [1, 0, 0], sizes = [1, 1, 256], strides = [1, 1, 1]} : vector<9x1x256xf32> to vector<1x1x256xf32>
    %15 = vector.shape_cast %14 : vector<1x1x256xf32> to vector<1x256xf32>
    %16 = vector.broadcast %13 : vector<4x1xf32> to vector<4x256xf32>
    %17 = vector.broadcast %15 : vector<1x256xf32> to vector<4x256xf32>
    %18 = arith.mulf %16, %17 : vector<4x256xf32>
    %19 = vector.extract_strided_slice %2 {offsets = [2, 0, 0], sizes = [1, 4, 1], strides = [1, 1, 1]} : vector<9x4x1xf32> to vector<1x4x1xf32>
    %20 = vector.shape_cast %19 : vector<1x4x1xf32> to vector<4x1xf32>
    %21 = vector.extract_strided_slice %3 {offsets = [2, 0, 0], sizes = [1, 1, 256], strides = [1, 1, 1]} : vector<9x1x256xf32> to vector<1x1x256xf32>
    %22 = vector.shape_cast %21 : vector<1x1x256xf32> to vector<1x256xf32>
    %23 = vector.broadcast %20 : vector<4x1xf32> to vector<4x256xf32>
    %24 = vector.broadcast %22 : vector<1x256xf32> to vector<4x256xf32>
    %25 = arith.mulf %23, %24 : vector<4x256xf32>
    %26 = vector.extract_strided_slice %2 {offsets = [3, 0, 0], sizes = [1, 4, 1], strides = [1, 1, 1]} : vector<9x4x1xf32> to vector<1x4x1xf32>
    %27 = vector.shape_cast %26 : vector<1x4x1xf32> to vector<4x1xf32>
    %28 = vector.extract_strided_slice %3 {offsets = [3, 0, 0], sizes = [1, 1, 256], strides = [1, 1, 1]} : vector<9x1x256xf32> to vector<1x1x256xf32>
    %29 = vector.shape_cast %28 : vector<1x1x256xf32> to vector<1x256xf32>
    %30 = vector.broadcast %27 : vector<4x1xf32> to vector<4x256xf32>
    %31 = vector.broadcast %29 : vector<1x256xf32> to vector<4x256xf32>
    %32 = arith.mulf %30, %31 : vector<4x256xf32>
    %33 = vector.extract_strided_slice %2 {offsets = [4, 0, 0], sizes = [1, 4, 1], strides = [1, 1, 1]} : vector<9x4x1xf32> to vector<1x4x1xf32>
    %34 = vector.shape_cast %33 : vector<1x4x1xf32> to vector<4x1xf32>
    %35 = vector.extract_strided_slice %3 {offsets = [4, 0, 0], sizes = [1, 1, 256], strides = [1, 1, 1]} : vector<9x1x256xf32> to vector<1x1x256xf32>
    %36 = vector.shape_cast %35 : vector<1x1x256xf32> to vector<1x256xf32>
    %37 = vector.broadcast %34 : vector<4x1xf32> to vector<4x256xf32>
    %38 = vector.broadcast %36 : vector<1x256xf32> to vector<4x256xf32>
    %39 = arith.mulf %37, %38 : vector<4x256xf32>
    %40 = vector.extract_strided_slice %2 {offsets = [5, 0, 0], sizes = [1, 4, 1], strides = [1, 1, 1]} : vector<9x4x1xf32> to vector<1x4x1xf32>
    %41 = vector.shape_cast %40 : vector<1x4x1xf32> to vector<4x1xf32>
    %42 = vector.extract_strided_slice %3 {offsets = [5, 0, 0], sizes = [1, 1, 256], strides = [1, 1, 1]} : vector<9x1x256xf32> to vector<1x1x256xf32>
    %43 = vector.shape_cast %42 : vector<1x1x256xf32> to vector<1x256xf32>
    %44 = vector.broadcast %41 : vector<4x1xf32> to vector<4x256xf32>
    %45 = vector.broadcast %43 : vector<1x256xf32> to vector<4x256xf32>
    %46 = arith.mulf %44, %45 : vector<4x256xf32>
    %47 = vector.extract_strided_slice %2 {offsets = [6, 0, 0], sizes = [1, 4, 1], strides = [1, 1, 1]} : vector<9x4x1xf32> to vector<1x4x1xf32>
    %48 = vector.shape_cast %47 : vector<1x4x1xf32> to vector<4x1xf32>
    %49 = vector.extract_strided_slice %3 {offsets = [6, 0, 0], sizes = [1, 1, 256], strides = [1, 1, 1]} : vector<9x1x256xf32> to vector<1x1x256xf32>
    %50 = vector.shape_cast %49 : vector<1x1x256xf32> to vector<1x256xf32>
    %51 = vector.broadcast %48 : vector<4x1xf32> to vector<4x256xf32>
    %52 = vector.broadcast %50 : vector<1x256xf32> to vector<4x256xf32>
    %53 = arith.mulf %51, %52 : vector<4x256xf32>
    %54 = vector.extract_strided_slice %2 {offsets = [7, 0, 0], sizes = [1, 4, 1], strides = [1, 1, 1]} : vector<9x4x1xf32> to vector<1x4x1xf32>
    %55 = vector.shape_cast %54 : vector<1x4x1xf32> to vector<4x1xf32>
    %56 = vector.extract_strided_slice %3 {offsets = [7, 0, 0], sizes = [1, 1, 256], strides = [1, 1, 1]} : vector<9x1x256xf32> to vector<1x1x256xf32>
    %57 = vector.shape_cast %56 : vector<1x1x256xf32> to vector<1x256xf32>
    %58 = vector.broadcast %55 : vector<4x1xf32> to vector<4x256xf32>
    %59 = vector.broadcast %57 : vector<1x256xf32> to vector<4x256xf32>
    %60 = arith.mulf %58, %59 : vector<4x256xf32>
    %61 = vector.extract_strided_slice %2 {offsets = [8, 0, 0], sizes = [1, 4, 1], strides = [1, 1, 1]} : vector<9x4x1xf32> to vector<1x4x1xf32>
    %62 = vector.shape_cast %61 : vector<1x4x1xf32> to vector<4x1xf32>
    %63 = vector.extract_strided_slice %3 {offsets = [8, 0, 0], sizes = [1, 1, 256], strides = [1, 1, 1]} : vector<9x1x256xf32> to vector<1x1x256xf32>
    %64 = vector.shape_cast %63 : vector<1x1x256xf32> to vector<1x256xf32>
    %65 = vector.broadcast %62 : vector<4x1xf32> to vector<4x256xf32>
    %66 = vector.broadcast %64 : vector<1x256xf32> to vector<4x256xf32>
    %67 = arith.mulf %65, %66 : vector<4x256xf32>
    %c0_12 = arith.constant 0 : index
    %c0_13 = arith.constant 0 : index
    %c0_14 = arith.constant 0 : index
    %68 = vector.load %arg1[%c0_12, %c0_13, %c0_14] : memref<1x4x256xf32, #tpu.memory_space<vmem>>, vector<1x4x256xf32>
    %69 = vector.shape_cast %68 : vector<1x4x256xf32> to vector<4x256xf32>
    %70 = vector.extract_strided_slice %69 {offsets = [0, 0], sizes = [1, 256], strides = [1, 1]} : vector<4x256xf32> to vector<1x256xf32>
    %71 = vector.extract_strided_slice %0 {offsets = [0, 0, 0], sizes = [1, 4, 1], strides = [1, 1, 1]} : vector<4x4x1xf32> to vector<1x4x1xf32>
    %72 = vector.shape_cast %71 : vector<1x4x1xf32> to vector<4x1xf32>
    %73 = vector.broadcast %70 : vector<1x256xf32> to vector<4x256xf32>
    %74 = vector.broadcast %72 : vector<4x1xf32> to vector<4x256xf32>
    %75 = arith.mulf %73, %74 : vector<4x256xf32>
    %76 = vector.extract_strided_slice %69 {offsets = [1, 0], sizes = [1, 256], strides = [1, 1]} : vector<4x256xf32> to vector<1x256xf32>
    %77 = vector.extract_strided_slice %0 {offsets = [1, 0, 0], sizes = [1, 4, 1], strides = [1, 1, 1]} : vector<4x4x1xf32> to vector<1x4x1xf32>
    %78 = vector.shape_cast %77 : vector<1x4x1xf32> to vector<4x1xf32>
    %79 = vector.broadcast %76 : vector<1x256xf32> to vector<4x256xf32>
    %80 = vector.broadcast %78 : vector<4x1xf32> to vector<4x256xf32>
    %81 = arith.mulf %79, %80 : vector<4x256xf32>
    %82 = arith.addf %75, %81 : vector<4x256xf32>
    %83 = vector.extract_strided_slice %69 {offsets = [2, 0], sizes = [1, 256], strides = [1, 1]} : vector<4x256xf32> to vector<1x256xf32>
    %84 = vector.extract_strided_slice %0 {offsets = [2, 0, 0], sizes = [1, 4, 1], strides = [1, 1, 1]} : vector<4x4x1xf32> to vector<1x4x1xf32>
    %85 = vector.shape_cast %84 : vector<1x4x1xf32> to vector<4x1xf32>
    %86 = vector.broadcast %83 : vector<1x256xf32> to vector<4x256xf32>
    %87 = vector.broadcast %85 : vector<4x1xf32> to vector<4x256xf32>
    %88 = arith.mulf %86, %87 : vector<4x256xf32>
    %89 = arith.addf %82, %88 : vector<4x256xf32>
    %90 = vector.extract_strided_slice %69 {offsets = [3, 0], sizes = [1, 256], strides = [1, 1]} : vector<4x256xf32> to vector<1x256xf32>
    %91 = vector.extract_strided_slice %0 {offsets = [3, 0, 0], sizes = [1, 4, 1], strides = [1, 1, 1]} : vector<4x4x1xf32> to vector<1x4x1xf32>
    %92 = vector.shape_cast %91 : vector<1x4x1xf32> to vector<4x1xf32>
    %93 = vector.broadcast %90 : vector<1x256xf32> to vector<4x256xf32>
    %94 = vector.broadcast %92 : vector<4x1xf32> to vector<4x256xf32>
    %95 = arith.mulf %93, %94 : vector<4x256xf32>
    %96 = arith.addf %89, %95 : vector<4x256xf32>
    %97 = vector.broadcast %1 : vector<4x1xf32> to vector<4x256xf32>
    %98 = arith.addf %96, %97 : vector<4x256xf32>
    %cst = arith.constant 0.000000e+00 : f32
    %99 = vector.broadcast %cst : f32 to vector<4x256xf32>
    %100 = arith.maximumf %98, %99 : vector<4x256xf32>
    %c0_15 = arith.constant 0 : index
    %c0_16 = arith.constant 0 : index
    %c0_17 = arith.constant 0 : index
    %101 = vector.load %arg7[%c0_15, %c0_16, %c0_17] : memref<1x8x256xf32, #tpu.memory_space<vmem>>, vector<1x4x256xf32>
    %102 = vector.shape_cast %101 : vector<1x4x256xf32> to vector<4x256xf32>
    %103 = vector.shape_cast %100 : vector<4x256xf32> to vector<1x4x256xf32>
    tpu.vector_store %arg7[%c0_15, %c0_16, %c0_17], %103 {strides = array<i32>} : memref<1x8x256xf32, #tpu.memory_space<vmem>>, vector<1x4x256xf32>,
    %104 = arith.mulf %100, %39 : vector<4x256xf32>
    %105 = vector.broadcast %4 : vector<4x1xf32> to vector<4x256xf32>
    %106 = arith.addf %104, %105 : vector<4x256xf32>
    %c17_i32 = arith.constant 17 : i32
    %107 = tpu.dynamic_rotate %100 by %c17_i32 dim 1 : vector<4x256xf32>, i32 -> vector<4x256xf32>
    %108 = arith.mulf %107, %11 : vector<4x256xf32>
    %109 = arith.addf %106, %108 : vector<4x256xf32>
    %c16_i32 = arith.constant 16 : i32
    %110 = tpu.dynamic_rotate %100 by %c16_i32 dim 1 : vector<4x256xf32>, i32 -> vector<4x256xf32>
    %111 = arith.mulf %110, %18 : vector<4x256xf32>
    %112 = arith.addf %109, %111 : vector<4x256xf32>
    %c15_i32 = arith.constant 15 : i32
    %113 = tpu.dynamic_rotate %100 by %c15_i32 dim 1 : vector<4x256xf32>, i32 -> vector<4x256xf32>
    %114 = arith.mulf %113, %25 : vector<4x256xf32>
    %115 = arith.addf %112, %114 : vector<4x256xf32>
    %c1_i32 = arith.constant 1 : i32
    %116 = tpu.dynamic_rotate %100 by %c1_i32 dim 1 : vector<4x256xf32>, i32 -> vector<4x256xf32>
    %117 = arith.mulf %116, %32 : vector<4x256xf32>
    %118 = arith.addf %115, %117 : vector<4x256xf32>
    %c255_i32 = arith.constant 255 : i32
    %119 = tpu.dynamic_rotate %100 by %c255_i32 dim 1 : vector<4x256xf32>, i32 -> vector<4x256xf32>
    %120 = arith.mulf %119, %46 : vector<4x256xf32>
    %121 = arith.addf %118, %120 : vector<4x256xf32>
    %c241_i32 = arith.constant 241 : i32
    %122 = tpu.dynamic_rotate %100 by %c241_i32 dim 1 : vector<4x256xf32>, i32 -> vector<4x256xf32>
    %123 = arith.mulf %122, %53 : vector<4x256xf32>
    %124 = arith.addf %121, %123 : vector<4x256xf32>
    %c240_i32 = arith.constant 240 : i32
    %125 = tpu.dynamic_rotate %100 by %c240_i32 dim 1 : vector<4x256xf32>, i32 -> vector<4x256xf32>
    %126 = arith.mulf %125, %60 : vector<4x256xf32>
    %127 = arith.addf %124, %126 : vector<4x256xf32>
    %c239_i32 = arith.constant 239 : i32
    %128 = tpu.dynamic_rotate %100 by %c239_i32 dim 1 : vector<4x256xf32>, i32 -> vector<4x256xf32>
    %129 = arith.mulf %128, %67 : vector<4x256xf32>
    %130 = arith.addf %127, %129 : vector<4x256xf32>
    %cst_18 = arith.constant 0.000000e+00 : f32
    %131 = vector.broadcast %cst_18 : f32 to vector<4x256xf32>
    %132 = arith.maximumf %130, %131 : vector<4x256xf32>
    %c0_19 = arith.constant 0 : index
    %c4 = arith.constant 4 : index
    %c0_20 = arith.constant 0 : index
    %133 = vector.load %arg7[%c0_19, %c4, %c0_20] : memref<1x8x256xf32, #tpu.memory_space<vmem>>, vector<1x4x256xf32>
    %134 = vector.shape_cast %133 : vector<1x4x256xf32> to vector<4x256xf32>
    %135 = vector.shape_cast %132 : vector<4x256xf32> to vector<1x4x256xf32>
    tpu.vector_store %arg7[%c0_19, %c4, %c0_20], %135 {strides = array<i32>} : memref<1x8x256xf32, #tpu.memory_space<vmem>>, vector<1x4x256xf32>,
    return
  }
  func.func @transform_0(%arg0: i32) -> (i32, i32, i32) {
    %c0_i32 = arith.constant 0 : i32
    %c0_i32_0 = arith.constant 0 : i32
    %c0_i32_1 = arith.constant 0 : i32
    return %arg0, %c0_i32, %c0_i32_0 : i32, i32, i32
  }
  func.func @transform_1(%arg0: i32) -> (i32, i32, i32) {
    %c0_i32 = arith.constant 0 : i32
    %c0_i32_0 = arith.constant 0 : i32
    %c0_i32_1 = arith.constant 0 : i32
    %c0_i32_2 = arith.constant 0 : i32
    return %c0_i32, %c0_i32_0, %c0_i32_1 : i32, i32, i32
  }
  func.func @transform_2(%arg0: i32) -> (i32, i32) {
    %c0_i32 = arith.constant 0 : i32
    %c0_i32_0 = arith.constant 0 : i32
    %c0_i32_1 = arith.constant 0 : i32
    return %c0_i32, %c0_i32_0 : i32, i32
  }
  func.func @transform_3(%arg0: i32) -> (i32, i32, i32) {
    %c0_i32 = arith.constant 0 : i32
    %c0_i32_0 = arith.constant 0 : i32
    %c0_i32_1 = arith.constant 0 : i32
    %c0_i32_2 = arith.constant 0 : i32
    return %c0_i32, %c0_i32_0, %c0_i32_1 : i32, i32, i32
  }
  func.func @transform_4(%arg0: i32) -> (i32, i32, i32) {
    %c0_i32 = arith.constant 0 : i32
    %c0_i32_0 = arith.constant 0 : i32
    %c0_i32_1 = arith.constant 0 : i32
    %c0_i32_2 = arith.constant 0 : i32
    return %c0_i32, %c0_i32_0, %c0_i32_1 : i32, i32, i32
  }
  func.func @transform_5(%arg0: i32) -> (i32, i32) {
    %c0_i32 = arith.constant 0 : i32
    %c0_i32_0 = arith.constant 0 : i32
    %c0_i32_1 = arith.constant 0 : i32
    return %c0_i32, %c0_i32_0 : i32, i32
  }
  func.func @transform_6(%arg0: i32) -> (i32, i32, i32) {
    %c0_i32 = arith.constant 0 : i32
    %c0_i32_0 = arith.constant 0 : i32
    %c0_i32_1 = arith.constant 0 : i32
    return %arg0, %c0_i32, %c0_i32_0 : i32, i32, i32
  }
}

</mosaic_0001>

<bundles_post_ra>
// kernel: tpu_custom_call.1
= control target key start
LH: loop header
LB: loop body
LE: loop exit
PB: predicated region body
PF: predicated region fallthrough
CT: control target
= control target key end

     0   :  { %11 = vsyncpa [#allocation3], 0  ;;  %s1017_s0 = inlined_call_operand.vmem [shape: f32[2,4,256], index: 0, kind: input, shape index: {}]   ;;  %s1018_s1 = inlined_call_operand.vmem [shape: f32[4,4,1], index: 1, kind: input, shape index: {}]   ;;  %s1019_s2 = inlined_call_operand.vmem [shape: f32[4,1], index: 2, kind: input, shape index: {}]   ;;  %s1020_s3 = inlined_call_operand.vmem [shape: f32[9,4,1], index: 3, kind: input, shape index: {}]   ;;  %s1021_s4 = inlined_call_operand.vmem [shape: f32[9,1,256], index: 4, kind: input, shape index: {}]   ;;  %s1022_s5 = inlined_call_operand.vmem [shape: f32[4,1], index: 5, kind: input, shape index: {}]   ;;  %s1023_s6 = inlined_call_operand.hbm [shape: f32[2,8,256], index: 6, kind: output, shape index: {}]  }
   0x1   :  { %13 = vsyncpa [#allocation3 + $0x1], 0  ;;  %s811_s21 = smov 0   ;;  %s813_s22 = smov 0  }
   0x2   :  { %s815_s23 = smov 0   ;;  %s817_s24 = smov 0  }
   0x3 LB: > { %s832_s25 = sadd.s32 4294967295, %s765_s24   ;;  %s638_s26 = sadd.s32 4294967294, %s765_s24   ;;  %s765_s24 = sphi %s817_s24, %s1029_s24   ;;  %s761_s23 = sphi %s815_s23, %s1028_s23   ;;  %s757_s22 = sphi %s813_s22, %s1027_s22   ;;  %s753_s21 = sphi %s811_s21, %s1026_s21  }
   0x4   : > { %s836_s27 = sadd.s32 1, %s765_s24   ;;  %s157_s28 = sadd.s32 1, %s761_s23 }
   0x5   : > { %s154_s29 = ssub.s32 %s765_s24, %s836_s27  ;;  %p167_p0 = scmp.ne.s32.totalorder %s761_s23, %s757_s22 }
   0x6   : > { %p155_p1 = scmp.eq.s32.totalorder %s154_s29, 0  ;;  %p168_p2 = scmp.eq.s32.totalorder %s832_s25, 1 }
   0x7   : > { %p173_p3 = scmp.ne.s32.totalorder %s757_s22, %s753_s21  ;;  %p174_p4 = scmp.eq.s32.totalorder %s638_s26, 1 }
   0x8   : > { %s847_s30 = scalar_select %p155_p1, %s761_s23, %s157_s28  }
   0x9   : > { %p849_p5 = por %p168_p2, %p167_p0  ;;  %p853_p6 = por %p174_p4, %p173_p3 }
   0xa   : > { %p641_p7 = scmp.ge.s32.totalorder %s765_s24, 1  ;;  %p215_p8 = scmp.lt.s32.totalorder %s765_s24, 3 }
   0xc   : > { %p216_p9 = pnand %p641_p7, %p215_p8 }
   0xd   : > { %p245_p10 = scmp.lt.s32.totalorder (!%p216_p9), %s832_s25, 1  ;;  %s242_s12 = sand.u32 (!%p216_p9), 1, %s757_s22  }
   0xe   : > { %219 = sbr.rel (%p216_p9) target bundleno = 332 (0x14c), region = 44  ;;  %s642_s13 = sshll.u32 (!%p216_p9), %s242_s12, 4 }
   0xf   : > { %s768_s14 = smov (!%p216_p9), 17   ;;  %s769_s15 = smov (!%p216_p9), 15  }
  0x10   : > { %s917_s16 = scalar_lea.vmem (!%p216_p9), [#allocation2], %s642_s13  ;;  %s770_s17 = smov (!%p216_p9), 16  }
  0x11   : > { %s771_s18 = smov (!%p216_p9), 1   ;;  %s772_s19 = smov (!%p216_p9), 113  }
  0x12   : > { %s773_s20 = smov (!%p216_p9), 127   ;;  %s774_s26 = smov (!%p216_p9), 112  }
  0x13   : > { %v257_v0 = vld [vmem:[%s1020_s3 + $0x8] sm:$0xf]  ;;  %v255_v1 = vld [vmem:[%s1020_s3] sm:$0xf]  ;;  %v767_v2 = vmov 0   ;;  %s246_s28 = scalar_select %p245_p10, %s832_s25, 1 }
  0x14   : > { %701 = vset.pattern.permute.xlu1 %v767_v2  ;;  %700 = vset.pattern.permute.xlu0 %v767_v2  ;;  %v250_v3 = vld [vmem:[%s1018_s1] sm:$0xf]  ;;  %v258_v4 = vld [vmem:[%s1020_s3 + $0xc] sm:$0xf]  ;;  %v256_v5 = vld [vmem:[%s1020_s3 + $0x4] sm:$0xf] }
  0x15   : > { %300 = vperm.xlu1 %701, %v257_v0   ;;  %276 = vperm.xlu0 %700, %v255_v1   ;;  %v251_v6 = vld [vmem:[%s1018_s1 + $0x4] sm:$0xf]  ;;  %v253_v7 = vld [vmem:[%s1018_s1 + $0xc] sm:$0xf]  ;;  %v252_v8 = vld [vmem:[%s1018_s1 + $0x8] sm:$0xf]  ;;  %v466_v0 = vlaneseq }
  0x16   : > { %702 = vset.pattern.permute.xlu2 %v767_v2  ;;  %v254_v9 = vld [vmem:[%s1019_s2] sm:$0xf]  ;;  %v260_v10 = vld [vmem:[%s1020_s3 + $0x14] sm:$0xf]  ;;  %v259_v11 = vld [vmem:[%s1020_s3 + $0x10] sm:$0xf] }
  0x17   : > { %392 = vperm.xlu2 %702, %v250_v3   ;;  %v261_v12 = vld [vmem:[%s1020_s3 + $0x18] sm:$0xf]  ;;  %v262_v13 = vld [vmem:[%s1020_s3 + $0x1c] sm:$0xf]  ;;  %v273_v14 = vld [vmem:[%s1022_s5] sm:$0xf] }
  0x18   : > { %s650_s29 = sshll.u32 %s246_s28, 3  ;;  %s775_s28 = smov 111   ;;  %v263_v59 = vld [vmem:[%s1020_s3 + $0x20] sm:$0xf]  ;;  %v268_v63 = vld [vmem:[%s1021_s4 + $0x8] sm:$0x3] }
  0x19   : > { %s249_s11 = scalar_lea.vmem %s1017_s0, %s650_s29  ;;  %s723_s13 = scalar_lea.hbm %s1023_s6, 32 }
  0x1a   : > { %v382_v17 = vld [vmem:[%s249_s11] sm:$0xff] }
  0x1b   : > { %v384_v19 = vperm.slane %v382_v17, 0  ;;  %v385_v20 = vperm.slane %v382_v17, 4  ;;  %v397_v21 = vperm.slane %v382_v17, 1  ;;  %v398_v22 = vperm.slane %v382_v17, 5 }
  0x1c   : > { %v412_v29 = vperm.slane %v382_v17, 2  ;;  %v413_v30 = vperm.slane %v382_v17, 6  ;;  %v427_v31 = vperm.slane %v382_v17, 3  ;;  %v428_v32 = vperm.slane %v382_v17, 7 }
  0x1d   : > { %312 = vperm.xlu1 %701, %v258_v4   ;;  %288 = vperm.xlu0 %700, %v256_v5   ;;  %v388_v23 = vperm.slane %v384_v19, 0  ;;  %v389_v24 = vperm.slane %v385_v20, 0  ;;  %v401_v27 = vperm.slane %v397_v21, 1  ;;  %v402_v28 = vperm.slane %v398_v22, 1  ;;  %v265_v20 = vld [vmem:[%s1021_s4 + $0x2] sm:$0x3] }
  0x1e   : > { %v416_v38 = vperm.slane %v412_v29, 2  ;;  %v417_v39 = vperm.slane %v413_v30, 2  ;;  %v431_v40 = vperm.slane %v427_v31, 3  ;;  %v432_v41 = vperm.slane %v428_v32, 3 }
  0x1f   : > { %405 = vperm.xlu2 %702, %v251_v6   ;;  %v328_v4 = vperm.slane %v268_v63, 0  ;;  %v329_v5 = vperm.slane %v268_v63, 1  ;;  %v264_v6 = vld [vmem:[%s1021_s4] sm:$0x3]  ;;  %v292_v30 = vperm.slane %v265_v20, 0  ;;  %v293_v31 = vperm.slane %v265_v20, 1 }
  0x20   : > { %v271_v20 = vld [vmem:[%s1021_s4 + $0xe] sm:$0x3] }
  0x25   : > { %435 = vperm.xlu1 %701, %v253_v7   ;;  %420 = vperm.xlu0 %700, %v252_v8   ;;  %v936_v7 = vand.u32 127, %v466_v0  ;;  %v280_v8 = vperm.slane %v264_v6, 0 }
  0x27   : > { %444 = vperm.xlu2 %702, %v254_v9   ;;  %v281_v9 = vperm.slane %v264_v6, 1  ;;  %vm468_vm0 = vcmp.lt.s32.totalorder %v936_v7, 17  ;;  %vm479_vm1 = vcmp.lt.s32.totalorder %v936_v7, 16  ;;  %vm501_vm2 = vcmp.lt.s32.totalorder %v936_v7, 1 }
  0x28   : > { %vm490_vm3 = vcmp.lt.s32.totalorder %v936_v7, 15  ;;  %vm512_vm4 = vcmp.lt.s32.totalorder %v936_v7, 127  ;;  %vm523_vm5 = vcmp.lt.s32.totalorder %v936_v7, 113  ;;  %vm534_vm6 = vcmp.lt.s32.totalorder %v936_v7, 112 }
  0x29   : > { %vm545_vm7 = vcmp.lt.s32.totalorder %v936_v7, 111 }
  0x2d   : > { %336 = vperm.xlu1 %701, %v260_v10   ;;  %324 = vperm.xlu0 %700, %v259_v11  }
  0x2f   : > { %348 = vperm.xlu2 %702, %v261_v12  }
  0x35   : > { %360 = vperm.xlu0 %700, %v262_v13  }
  0x3d   : > { %457 = vperm.xlu0 %700, %v273_v14  }
  0x71   : > { %v393_v18 = vpop.permute.xlu2 %392 }
  0x72   : > { %v395_v33 = vmul.f32 %v393_v18, %v388_v23  ;;  %v396_v34 = vmul.f32 %v393_v18, %v389_v24 }
  0x79   : > { %v406_v35 = vpop.permute.xlu2 %405 }
  0x7a   : > { %v408_v36 = vmul.f32 %v406_v35, %v401_v27  ;;  %v409_v37 = vmul.f32 %v406_v35, %v402_v28 }
  0x7c   : > { %v410_v44 = vadd.f32 %v408_v36, %v395_v33  ;;  %v411_v45 = vadd.f32 %v409_v37, %v396_v34  ;;  %v266_v36 = vld [vmem:[%s1021_s4 + $0x4] sm:$0x3] }
  0x81   : > { %v445_v54 = vpop.permute.xlu2 %444 }
  0x87   : > { %v906_v15 = vpop.permute.xlu1 %300  ;;  %v908_v16 = vpop.permute.xlu0 %276 }
  0x88   : > { %v284_v13 = vmul.f32 %v280_v8, %v908_v16  ;;  %v285_v14 = vmul.f32 %v281_v9, %v908_v16  ;;  %v270_v9 = vld [vmem:[%s1021_s4 + $0xc] sm:$0x3] }
  0x89   : > { %v926_v62 = vpop.permute.xlu2 %348 }
  0x8f   : > { %v910_v25 = vpop.permute.xlu1 %312  ;;  %v912_v26 = vpop.permute.xlu0 %288 }
  0x90   : > { %v296_v16 = vmul.f32 %v292_v30, %v912_v26  ;;  %v297_v34 = vmul.f32 %v293_v31, %v912_v26  ;;  %v364_v31 = vperm.slane %v271_v20, 0 }
  0x97   : > { %v436_v42 = vpop.permute.xlu1 %435  ;;  %v421_v43 = vpop.permute.xlu0 %420 }
  0x98   : > { %v423_v46 = vmul.f32 %v421_v43, %v416_v38  ;;  %v424_v47 = vmul.f32 %v421_v43, %v417_v39  ;;  %v438_v48 = vmul.f32 %v436_v42, %v431_v40  ;;  %v439_v49 = vmul.f32 %v436_v42, %v432_v41  ;;  %v267_v42 = vld [vmem:[%s1021_s4 + $0x6] sm:$0x3] }
  0x99   : > { %v316_v26 = vperm.slane %v267_v42, 0 }
  0x9a   : > { %v425_v50 = vadd.f32 %v423_v46, %v410_v44  ;;  %v426_v51 = vadd.f32 %v424_v47, %v411_v45  ;;  %v304_v44 = vperm.slane %v266_v36, 0  ;;  %v305_v45 = vperm.slane %v266_v36, 1 }
  0x9c   : > { %v440_v52 = vadd.f32 %v438_v48, %v425_v50  ;;  %v441_v53 = vadd.f32 %v439_v49, %v426_v51  ;;  %v317_v48 = vperm.slane %v267_v42, 1  ;;  %v308_v49 = vmul.f32 %v304_v44, %v906_v15 }
  0x9d   : > { %v309_v50 = vmul.f32 %v305_v45, %v906_v15  ;;  %v269_v15 = vld [vmem:[%s1021_s4 + $0xa] sm:$0x3] }
  0x9e   : > { %v447_v55 = vadd.f32 %v445_v54, %v440_v52  ;;  %v448_v56 = vadd.f32 %v445_v54, %v441_v53 }
  0x9f   : > { %v325_v60 = vpop.permute.xlu0 %324  ;;  %v931_v3 = vpop.permute.xlu1 %336 }
  0xa0   : > { %v449_v57 = vmax.f32 %v447_v55, 0.0  ;;  %v450_v58 = vmax.f32 %v448_v56, 0.0  ;;  %v332_v10 = vmul.f32 %v328_v4, %v325_v60  ;;  %v333_v11 = vmul.f32 %v329_v5, %v325_v60 }
  0xa1   : > { %v320_v56 = vmul.f32 %v316_v26, %v910_v25 }
  0xa2   : > { %464 = vrot.lane.b32.xlu2 %v450_v58, %s768_s14  ;;  %486 = vrot.lane.b32.xlu0 %v449_v57, %s769_s15  ;;  %451 = vst [vmem:[%s917_s16] sm:$0xf] %v449_v57  ;;  %v453_v17 = vmul.f32 %v449_v57, %v332_v10  ;;  %v454_v18 = vmul.f32 %v450_v58, %v333_v11  ;;  %v341_v10 = vperm.slane %v269_v15, 1  ;;  %v352_v11 = vperm.slane %v270_v9, 0 }
  0xa3   : > { %462 = vrot.lane.b32.xlu1 %v449_v57, %s768_s14  ;;  %452 = vst [vmem:[%s917_s16 + $0x8] sm:$0xf] %v450_v58 }
  0xa7   : > { %v924_v61 = vpop.permute.xlu0 %360 }
  0xaa   : > { %477 = vrot.lane.b32.xlu2 %v450_v58, %s770_s17  ;;  %499 = vrot.lane.b32.xlu0 %v450_v58, %s771_s18 }
  0xab   : > { %475 = vrot.lane.b32.xlu1 %v449_v57, %s770_s17  ;;  %s651_s17 = sshll.u32 %s832_s25, 4 }
  0xaf   : > { %v458_v1 = vpop.permute.xlu0 %457 }
  0xb0   : > { %v460_v24 = vadd.f32 %v458_v1, %v453_v17  ;;  %v461_v27 = vadd.f32 %v458_v1, %v454_v18 }
  0xb2   : > { %497 = vrot.lane.b32.xlu2 %v449_v57, %s771_s18  ;;  %519 = vrot.lane.b32.xlu0 %v449_v57, %s772_s19 }
  0xb3   : > { %488 = vrot.lane.b32.xlu1 %v450_v58, %s769_s15 }
  0xba   : > { %510 = vrot.lane.b32.xlu2 %v450_v58, %s773_s20  ;;  %532 = vrot.lane.b32.xlu0 %v450_v58, %s774_s26 }
  0xbb   : > { %508 = vrot.lane.b32.xlu1 %v449_v57, %s773_s20  ;;  %s574_s20 = scalar_lea.hbm %s1023_s6, %s651_s17 }
  0xbc   : > { %s578_s25 = sshll.u32 %s574_s20, 4  ;;  %s579_s25 = int_to_ptr.hbm [resolvable:$true] %s578_s25 }
  0xbd   : > { %s717_s29 = sshra.s32 %s579_s25, 4  ;;  %s718_s29 = int_to_ptr.hbm [resolvable:$true] %s717_s29 }
  0xbe   : > { %s719_s9 = scalar_lea.hbm %s718_s29, 16  ;;  %p724_p0 = scmp.lt.s32.totalorder %s718_s29, %s1023_s6 }
  0xbf   : > { %p720_p11 = scmp.ne.s32.totalorder %s718_s29, %s719_s9  ;;  %p725_p1 = scmp.lt.s32.totalorder %s723_s13, %s719_s9 }
  0xc1   : > { %p721_p12 = pnand %p720_p11, %p849_p5  ;;  %p726_p2 = por %p725_p1, %p724_p0 }
  0xc2   : > { %530 = vrot.lane.b32.xlu2 %v449_v57, %s774_s26  ;;  %543 = vrot.lane.b32.xlu0 %v450_v58, %s775_s28  ;;  %s576_s26 = sshll.u32 %s917_s16, 4  ;;  %s577_s26 = int_to_ptr.vmem [resolvable:$true] %s576_s26 }
  0xc3   : > { %521 = vrot.lane.b32.xlu1 %v450_v58, %s772_s19  ;;  %p722_p13 = pneg %p721_p12 }
  0xc5   : > { %p727_p3 = pnand %p726_p2, %p722_p13 }
  0xca   : > { %541 = vrot.lane.b32.xlu2 %v449_v57, %s775_s28  ;;  %v321_v57 = vmul.f32 %v317_v48, %v910_v25  ;;  %v340_v25 = vperm.slane %v269_v15, 0  ;;  %s563_s28 = scalar_lea.sflag [#allocation3], %s242_s12 }
  0xcb   : > { %372 = vperm.xlu1 %701, %v263_v59  }
  0xcc   : > { %v344_v18 = vmul.f32 %v340_v25, %v931_v3 }
  0xfc   : > { %v465_v2 = vpop.permute.xlu2 %464 }
 0x104   : > { %v478_v21 = vpop.permute.xlu2 %477 }
 0x10c   : > { %v498_v43 = vpop.permute.xlu2 %497 }
 0x114   : > { %v487_v12 = vpop.permute.xlu0 %486  ;;  %v511_v4 = vpop.permute.xlu2 %510 }
 0x115   : > { %v463_v19 = vpop.permute.xlu1 %462 }
 0x116   : > { %v469_v22 = vsel %vm468_vm0, %v463_v19, %v465_v2  ;;  %v470_v23 = vsel %vm468_vm0, %v465_v2, %v463_v19  ;;  %v345_v19 = vmul.f32 %v341_v10, %v931_v3  ;;  %v365_v3 = vperm.slane %v271_v20, 1 }
 0x117   : > { %v471_v28 = vmul.f32 %v470_v23, %v284_v13  ;;  %v472_v29 = vmul.f32 %v469_v22, %v285_v14  ;;  %v356_v22 = vmul.f32 %v352_v11, %v926_v62 }
 0x119   : > { %v473_v32 = vadd.f32 %v471_v28, %v460_v24  ;;  %v474_v33 = vadd.f32 %v472_v29, %v461_v27 }
 0x11c   : > { %v500_v37 = vpop.permute.xlu0 %499 }
 0x11d   : > { %v476_v35 = vpop.permute.xlu1 %475  ;;  %v502_v52 = vsel %vm501_vm2, %v498_v43, %v500_v37  ;;  %v503_v53 = vsel %vm501_vm2, %v500_v37, %v498_v43  ;;  %v368_v37 = vmul.f32 %v364_v31, %v924_v61 }
 0x11e   : > { %v480_v38 = vsel %vm479_vm1, %v476_v35, %v478_v21  ;;  %v481_v39 = vsel %vm479_vm1, %v478_v21, %v476_v35  ;;  %v504_v63 = vmul.f32 %v503_v53, %v320_v56  ;;  %v505_v0 = vmul.f32 %v502_v52, %v321_v57  ;;  %v531_v21 = vpop.permute.xlu2 %530 }
 0x11f   : > { %v482_v40 = vmul.f32 %v481_v39, %v296_v16  ;;  %v483_v41 = vmul.f32 %v480_v38, %v297_v34 }
 0x121   : > { %v484_v46 = vadd.f32 %v482_v40, %v473_v32  ;;  %v485_v47 = vadd.f32 %v483_v41, %v474_v33  ;;  %v272_v32 = vld [vmem:[%s1021_s4 + $0x10] sm:$0x3]  ;;  %v369_v40 = vmul.f32 %v365_v3, %v924_v61 }
 0x122   : > { %v376_v36 = vperm.slane %v272_v32, 0 }
 0x124   : > { %v520_v60 = vpop.permute.xlu0 %519 }
 0x125   : > { %v489_v51 = vpop.permute.xlu1 %488 }
 0x126   : > { %v491_v54 = vsel %vm490_vm3, %v487_v12, %v489_v51  ;;  %v492_v55 = vsel %vm490_vm3, %v489_v51, %v487_v12  ;;  %v353_v12 = vperm.slane %v270_v9, 1  ;;  %v542_v45 = vpop.permute.xlu2 %541 }
 0x127   : > { %v493_v58 = vmul.f32 %v492_v55, %v308_v49  ;;  %v494_v59 = vmul.f32 %v491_v54, %v309_v50 }
 0x128   : > { %v357_v23 = vmul.f32 %v353_v12, %v926_v62  ;;  %v377_v62 = vperm.slane %v272_v32, 1 }
 0x129   : > { %v495_v1 = vadd.f32 %v493_v58, %v484_v46  ;;  %v496_v2 = vadd.f32 %v494_v59, %v485_v47 }
 0x12b   : > { %v507_v5 = vadd.f32 %v505_v0, %v496_v2  ;;  %v506_v6 = vadd.f32 %v504_v63, %v495_v1 }
 0x12c   : > { %v533_v13 = vpop.permute.xlu0 %532 }
 0x12d   : > { %v509_v8 = vpop.permute.xlu1 %508  ;;  %v535_v38 = vsel %vm534_vm6, %v531_v21, %v533_v13  ;;  %v536_v39 = vsel %vm534_vm6, %v533_v13, %v531_v21 }
 0x12e   : > { %v513_v14 = vsel %vm512_vm4, %v509_v8, %v511_v4  ;;  %v514_v17 = vsel %vm512_vm4, %v511_v4, %v509_v8  ;;  %v537_v46 = vmul.f32 %v535_v38, %v368_v37  ;;  %v538_v47 = vmul.f32 %v536_v39, %v369_v40 }
 0x12f   : > { %v515_v27 = vmul.f32 %v513_v14, %v344_v18  ;;  %v516_v28 = vmul.f32 %v514_v17, %v345_v19 }
 0x131   : > { %v517_v34 = vadd.f32 %v515_v27, %v506_v6  ;;  %v518_v35 = vadd.f32 %v516_v28, %v507_v5 }
 0x134   : > { %v544_v41 = vpop.permute.xlu0 %543 }
 0x135   : > { %v522_v24 = vpop.permute.xlu1 %521  ;;  %v546_v49 = vsel %vm545_vm7, %v542_v45, %v544_v41  ;;  %v547_v50 = vsel %vm545_vm7, %v544_v41, %v542_v45 }
 0x136   : > { %v524_v29 = vsel %vm523_vm5, %v520_v60, %v522_v24  ;;  %v525_v30 = vsel %vm523_vm5, %v522_v24, %v520_v60 }
 0x137   : > { %v526_v33 = vmul.f32 %v524_v29, %v356_v22  ;;  %v527_v16 = vmul.f32 %v525_v30, %v357_v23 }
 0x139   : > { %v528_v42 = vadd.f32 %v526_v33, %v517_v34  ;;  %v529_v43 = vadd.f32 %v527_v16, %v518_v35 }
 0x13b   : > { %v540_v51 = vadd.f32 %v538_v47, %v529_v43  ;;  %v539_v52 = vadd.f32 %v537_v46, %v528_v42 }
 0x13d   : > { %v373_v44 = vpop.permute.xlu1 %372 }
 0x13e   : > { %v380_v26 = vmul.f32 %v376_v36, %v373_v44  ;;  %v381_v48 = vmul.f32 %v377_v62, %v373_v44 }
 0x140   : > { %v548_v61 = vmul.f32 %v546_v49, %v380_v26  ;;  %v549_v7 = vmul.f32 %v547_v50, %v381_v48 }
 0x142   : > { %v550_v53 = vadd.f32 %v548_v61, %v539_v52  ;;  %v551_v54 = vadd.f32 %v549_v7, %v540_v51 }
 0x144   : > { %v552_v55 = vmax.f32 %v550_v53, 0.0  ;;  %v553_v56 = vmax.f32 %v551_v54, 0.0 }
 0x146   : > { %v556_v57 = vrot.slane %v552_v55, 4  ;;  %v557_v58 = vrot.slane %v553_v56, 4 }
 0x148   : > { %560 = vst [vmem:[%s917_s16] sm:$0xf0] %v556_v57 }
 0x149   : > { %561 = vst [vmem:[%s917_s16 + $0x8] sm:$0xf0] %v557_v58 }
 0x14a   : > { %730 = shalt.err (!%p727_p3)
}
 0x14b   : > { %652 = dma.vmem_to_hbm [thread:$0]  (%p849_p5), %s577_s26, 256, %s579_s25, %s563_s28  }
 0x14c PF: > { %p658_p4 = scmp.ge.s32.totalorder %s765_s24, 2  ;;  %s590_s12 = sand.u32 1, %s753_s21  }
 0x14d   : > { %s591_s16 = scalar_lea.sflag [#allocation3], %s590_s12 }
 0x14e   : > { %p655_p7 = pnand %p658_p4, %p853_p6 }
 0x150   : > { %p656_p8 = pneg %p655_p7 }
 0x152   : > { %748 = dma.done.wait (%p656_p8), %s591_s16, 256  }
 0x153   : > { %750 = vsyncadd (%p656_p8), %s591_s16, 4294967040  ;;  %p16_p9 = scmp.ge.s32.totalorder %s836_s27, 4   ;;  %s1026_s21 = smov %s757_s22 }
 0x154   : > { %s1027_s22 = smov %s761_s23  ;;  %s1028_s23 = smov %s847_s30 }
 0x155   : > { %s1029_s24 = smov %s836_s27  ;;  %18 = sbr.rel (!%p16_p9) target bundleno = 3 (0x3), region = 79 }
 0x15a   :  { %597 = vsyncpa [#allocation3], 1 }
 0x15b   :  { %599 = vsyncpa [#allocation3 + $0x1], 1 }

</bundles_post_ra>
